<compile_context>
chip_gen: v6e
topology: v6e:2x2x1
jax: 0.10.0
libtpu: 0.0.40
codegen_flags: <defaults>
</compile_context>

<pallas_src>
import functools

import jax
import jax.numpy as jnp
from jax import lax
from jax.experimental import pallas as pl
from jax.experimental.pallas import tpu as pltpu


# ---------------------------------------------------------------------------
# helpers
# ---------------------------------------------------------------------------

def _round_up(n: int, m: int) -> int:
    return ((n + m - 1) // m) * m


def _tpu_vmem_info():
    """Returns (per-TensorCore VMEM budget with headroom, is_v7x)."""
    per_core = 64 << 20          # conservative default (= v7x per-TC VMEM)
    is_v7x = False
    try:
        info = pltpu.get_tpu_info()
        name = str(getattr(info, "chip_version", "") or "").lower()
        cap = int(getattr(info, "vmem_capacity_bytes", 0) or 0)
        if "7" in name:
            per_core, is_v7x = 64 << 20, True      # v7x: 64 MiB per core
        elif ("5" in name) or ("6" in name):
            per_core = 128 << 20                   # v5e/v6e: 128 MiB per core
        elif cap:
            per_core = min(cap, 64 << 20)          # unknown: never over-commit
    except Exception:
        pass
    return (per_core * 3) // 4, is_v7x             # headroom for compiler scratch


# ---------------------------------------------------------------------------
# kernels
# ---------------------------------------------------------------------------

def _fused_kernel(x_ref, wt_ref, b_ref, o_ref, *, inv_s):
    # x_ref/o_ref: (1, C, S) input dtype (S = full extent, no padding);
    # wt_ref: (C, C) f32 (pre-transposed weight); b_ref: (1, C) f32.
    x = x_ref[...]
    avg = jnp.sum(x, axis=-1, dtype=jnp.float32) * inv_s              # (1, C)
    logits = jnp.dot(avg, wt_ref[...],
                     preferred_element_type=jnp.float32) + b_ref[...]
    gate = jax.nn.sigmoid(logits).astype(o_ref.dtype)                 # cast once
    o_ref[...] = gate[:, :, None] * x                                 # input-dtype mul


def _reduce_kernel(x_ref, part_ref, *, s_total, s_tile, n_s, needs_mask):
    # x_ref: (1, C, s_tile); part_ref: (1, 1, 1, C) f32 partial channel sum,
    # resident across the last ("arbitrary") grid axis.
    s = pl.program_id(2)

    @pl.when(s == 0)
    def _():
        part_ref[...] = jnp.zeros_like(part_ref)

    x = x_ref[...]
    if needs_mask:  # static: ragged / over-covered final tile -> mask OOB lanes
        p = pl.program_id(1)
        start = (p * n_s + s) * s_tile
        lane = lax.broadcasted_iota(jnp.int32, x.shape, 2)
        x = jnp.where(lane + start < s_total, x, jnp.zeros_like(x))

    part_ref[...] += jnp.sum(x, axis=-1, dtype=jnp.float32)[:, None, None, :]


def _scale_kernel(x_ref, gate_ref, o_ref):
    # x_ref/o_ref: (1, C, s_tile); gate_ref: (1, C, 1) f32.
    # OOB lanes of a ragged final tile are garbage*gate but their writes are
    # clipped by the output DMA, so no masking is needed here.
    o_ref[...] = gate_ref[...].astype(o_ref.dtype) * x_ref[...]


# ---------------------------------------------------------------------------
# wrappers
# ---------------------------------------------------------------------------

def _self_gating_fused(x_flat, weight_t, bias2d, vmem_limit):
    B, C, S = x_flat.shape
    itemsize = jnp.dtype(x_flat.dtype).itemsize
    # TODO(synk): for B <= 2 on v7x, pipeline_mode=pl.Buffered(1) on the x/out
    # specs would extend the single-read fused regime within 64 MiB VMEM.
    return pl.pallas_call(
        functools.partial(_fused_kernel, inv_s=1.0 / S),
        out_shape=jax.ShapeDtypeStruct((B, C, S), x_flat.dtype),
        grid_spec=pltpu.PrefetchScalarGridSpec(
            num_scalar_prefetch=0,
            grid=(B,),
            in_specs=[
                pl.BlockSpec((1, C, S), lambda b: (b, 0, 0)),   # full-extent S
                pl.BlockSpec((C, C), lambda b: (0, 0)),
                pl.BlockSpec((1, C), lambda b: (0, 0)),
            ],
            out_specs=pl.BlockSpec((1, C, S), lambda b: (b, 0, 0)),
        ),
        compiler_params=pltpu.CompilerParams(
            dimension_semantics=("parallel",),
            vmem_limit_bytes=int(vmem_limit),
        ),
        cost_estimate=pl.CostEstimate(
            flops=2 * B * C * S + 2 * B * C * C,
            transcendentals=B * C,
            bytes_accessed=2 * B * C * S * itemsize + 4 * C * C + 8 * C,
        ),
    )(x_flat, weight_t, bias2d)


def _self_gating_tiled(x_flat, weight_t, bias2d, vmem_limit, is_v7x,
                       s_tile=None, n_split=None):
    B, C, S = x_flat.shape
    dtype = x_flat.dtype
    itemsize = jnp.dtype(dtype).itemsize

    # --- S tile size: target ~2 MiB per (1, C, s_tile) block (~4 MiB on v7x,
    #     where per-step overhead is a larger fraction), clamped to VMEM.
    if s_tile is None:
        target = (4 << 20) if is_v7x else (2 << 20)
        per_lane = C * itemsize
        s_tile = (target // max(per_lane, 1)) // 128 * 128
        # scale pass keeps ~4 tiles resident (in + out, double-buffered)
        by_vmem = (int(vmem_limit) // (5 * max(per_lane, 1))) // 128 * 128
        s_tile = min(s_tile, by_vmem)
    s_tile = max(128, (int(s_tile) // 128) * 128)
    s_tile = min(s_tile, _round_up(S, 128))
    if s_tile >= S:
        s_tile = S                    # full-extent block (exempt from 128 rule)

    n_tiles = pl.cdiv(S, s_tile)

    # --- megacore split of the reduce pass (v7x, small B) -------------------
    if n_split is None:
        n_split = 2 if (is_v7x and B < 2 and n_tiles >= 2) else 1
    n_split = max(1, min(int(n_split), n_tiles))
    n_s = pl.cdiv(n_tiles, n_split)
    needs_mask = (n_split * n_s * s_tile) != S

    # 1) f32 partial channel sums over S (no padding; ragged tile masked)
    def x_reduce_map(b, p, s):
        # clamp so a fully-OOB step of an uneven split still issues an
        # in-bounds DMA; the lane mask zeroes its contribution.
        return (b, 0, jnp.minimum(p * n_s + s, n_tiles - 1))

    partials = pl.pallas_call(
        functools.partial(_reduce_kernel, s_total=S, s_tile=s_tile,
                          n_s=n_s, needs_mask=needs_mask),
        out_shape=jax.ShapeDtypeStruct((B, n_split, 1, C), jnp.float32),
        grid_spec=pltpu.PrefetchScalarGridSpec(
            num_scalar_prefetch=0,
            grid=(B, n_split, n_s),
            in_specs=[pl.BlockSpec((1, C, s_tile), x_reduce_map)],
            out_specs=pl.BlockSpec((1, 1, 1, C), lambda b, p, s: (b, p, 0, 0)),
        ),
        compiler_params=pltpu.CompilerParams(
            dimension_semantics=("parallel", "parallel", "arbitrary"),
            vmem_limit_bytes=int(vmem_limit),
        ),
        cost_estimate=pl.CostEstimate(
            flops=B * C * S,
            transcendentals=0,
            bytes_accessed=B * C * S * itemsize + 4 * B * n_split * C,
        ),
    )(x_flat)

    # 2) gate = sigmoid(mean @ W.T + b) — tiny (B, C) op, plain jnp (no extra
    #    kernel launch / HBM round trip of a standalone gate kernel).
    avg = partials.reshape(B, n_split, C).sum(axis=1) * (1.0 / S)      # (B, C) f32
    gate = jax.nn.sigmoid(avg @ weight_t + bias2d)                     # (B, C) f32

    # 3) lane-tiled broadcast multiply, both grid axes parallel
    out = pl.pallas_call(
        _scale_kernel,
        out_shape=jax.ShapeDtypeStruct((B, C, S), dtype),
        grid_spec=pltpu.PrefetchScalarGridSpec(
            num_scalar_prefetch=0,
            grid=(B, n_tiles),
            in_specs=[
                pl.BlockSpec((1, C, s_tile), lambda b, s: (b, 0, s)),
                pl.BlockSpec((1, C, 1), lambda b, s: (b, 0, 0)),
            ],
            out_specs=pl.BlockSpec((1, C, s_tile), lambda b, s: (b, 0, s)),
        ),
        compiler_params=pltpu.CompilerParams(
            dimension_semantics=("parallel", "parallel"),
            vmem_limit_bytes=int(vmem_limit),
        ),
        cost_estimate=pl.CostEstimate(
            flops=B * C * S,
            transcendentals=0,
            bytes_accessed=2 * B * C * S * itemsize + 4 * B * C,
        ),
    )(x_flat, gate[:, :, None])

    return out


def self_gating(x, weight, bias, *, force_path=None, s_tile=None, n_split=None):
    """x: (B, C, T, H, W); weight: (C, C) nn.Linear weight; bias: (C,)."""
    B, C, T, H, W = x.shape
    S = T * H * W
    x_flat = x.reshape(B, C, S)

    # Pre-transpose the Linear weight once in the wrapper (x @ W.T == x @ W_t).
    weight_t = weight.T.astype(jnp.float32)
    bias2d = bias.reshape(1, C).astype(jnp.float32)

    budget, is_v7x = _tpu_vmem_info()
    itemsize = jnp.dtype(x.dtype).itemsize

    if force_path is None:
        # Fused path needs ~2x(in+out) = 4*C*S*itemsize of VMEM per grid step.
        fused_need = 4 * C * S * itemsize + 2 * C * C * 4 + (1 << 20)
        if is_v7x and B < 2:
            # (B,)-parallel fused grid would idle one v7x TensorCore; the
            # tiled path parallelizes over S (scale) and the split reduce.
            path = "tiled"
        else:
            path = "fused" if fused_need <= budget else "tiled"
    else:
        path = force_path

    if path == "fused":
        out_flat = _self_gating_fused(x_flat, weight_t, bias2d, budget)
    else:
        out_flat = _self_gating_tiled(x_flat, weight_t, bias2d, budget,
                                      is_v7x, s_tile=s_tile, n_split=n_split)

    return out_flat.reshape(B, C, T, H, W)


# ---------------------------------------------------------------------------
# demo / self-check
# ---------------------------------------------------------------------------

if __name__ == "__main__":
    key = jax.random.PRNGKey(0)
    kx, kw, kb = jax.random.split(key, 3)

    # Small shapes consistent with the module; S = 4*9*9 = 324 is deliberately
    # NOT a multiple of 128 to exercise the ragged-tile / no-padding paths.
    B, C, T, H, W = 2, 8, 4, 9, 9
    x = jax.random.normal(kx, (B, C, T, H, W), dtype=jnp.float32)

    # Deterministic parameter init (mimics nn.Linear(C, C) shapes).
    bound = 1.0 / jnp.sqrt(jnp.float32(C))
    weight = jax.random.uniform(kw, (C, C), minval=-bound, maxval=bound,
                                dtype=jnp.float32)
    bias = jax.random.uniform(kb, (C,), minval=-bound, maxval=bound,
                              dtype=jnp.float32)

    # Pure-JAX reference of the exact PyTorch semantics.
    avg_ref = x.mean(axis=(2, 3, 4))
    gate_ref = jax.nn.sigmoid(avg_ref @ weight.T + bias)
    ref = gate_ref[:, :, None, None, None] * x

    # Auto-selected path (fused at these shapes; full-extent S block, no pad).
    out = jax.block_until_ready(self_gating(x, weight, bias))
    assert out.shape == (B, C, T, H, W)
    assert jnp.allclose(out, ref, atol=1e-5, rtol=1e-5)

    # Tiled fallback with small tiles: ragged final S tile (324 = 2*128 + 68)
    # plus a 2-way split reduce (uneven split -> clamped index_map + mask).
    out_tiled = jax.block_until_ready(
        self_gating(x, weight, bias, force_path="tiled", s_tile=128, n_split=2))
    assert jnp.allclose(out_tiled, ref, atol=1e-5, rtol=1e-5)

    # Tiled fallback with default (byte-sized) tiles and no forced split.
    out_tiled2 = jax.block_until_ready(
        self_gating(x, weight, bias, force_path="tiled"))
    assert jnp.allclose(out_tiled2, ref, atol=1e-5, rtol=1e-5)

    print("KERNEL_OK")
</pallas_src>

<mosaic_0001>
module attributes {stable_mosaic.version = 11 : i64} {
  func.func @_fused_kernel(%arg0: i32, %arg1: memref<1x8x324xf32, #tpu.memory_space<vmem>>, %arg2: memref<8x8xf32, #tpu.memory_space<vmem>>, %arg3: memref<1x8xf32, #tpu.memory_space<vmem>>, %arg4: memref<1x8x324xf32, #tpu.memory_space<vmem>>) attributes {dimension_semantics = [#tpu.dimension_semantics<parallel>], iteration_bounds = array<i64: 2>, scalar_prefetch = 0 : i64, scratch_operands = 0 : i64, tpu.core_type = #tpu.core_type<tc>, window_params = [{transform_indices = @transform_0, window_bounds = array<i64: 1, 8, 324>}, {pipeline_mode = #tpu.pipeline_mode<synchronous>, transform_indices = @transform_1, window_bounds = array<i64: 8, 8>}, {pipeline_mode = #tpu.pipeline_mode<synchronous>, transform_indices = @transform_2, window_bounds = array<i64: 1, 8>}, {transform_indices = @transform_3, window_bounds = array<i64: 1, 8, 324>}]} {
    %c0 = arith.constant 0 : index
    %c0_0 = arith.constant 0 : index
    %c0_1 = arith.constant 0 : index
    %0 = vector.load %arg1[%c0, %c0_0, %c0_1] : memref<1x8x324xf32, #tpu.memory_space<vmem>>, vector<1x8x324xf32>
    %cst = arith.constant dense<0.000000e+00> : vector<1x8xf32>
    %1 = vector.multi_reduction <add>, %0, %cst [2] : vector<1x8x324xf32> to vector<1x8xf32>
    %cst_2 = arith.constant 0.00308641978 : f32
    %2 = vector.broadcast %cst_2 : f32 to vector<1x8xf32>
    %3 = arith.mulf %1, %2 : vector<1x8xf32>
    %c0_3 = arith.constant 0 : index
    %c0_4 = arith.constant 0 : index
    %4 = vector.load %arg2[%c0_3, %c0_4] : memref<8x8xf32, #tpu.memory_space<vmem>>, vector<8x8xf32>
    %cst_5 = arith.constant dense<0.000000e+00> : vector<1x8xf32>
    %5 = tpu.matmul %3, %4, %cst_5 {dimension_numbers = #tpu.dot_dimension_numbers<[1], [0], [0], [1], [0, 0, 1, 1], [], []>} : vector<1x8xf32>, vector<8x8xf32>, vector<1x8xf32> -> vector<1x8xf32>
    %c0_6 = arith.constant 0 : index
    %c0_7 = arith.constant 0 : index
    %6 = vector.load %arg3[%c0_6, %c0_7] : memref<1x8xf32, #tpu.memory_space<vmem>>, vector<1x8xf32>
    %7 = arith.addf %5, %6 : vector<1x8xf32>
    %8 = arith.negf %7 : vector<1x8xf32>
    %9 = math.exp %8 : vector<1x8xf32>
    %cst_8 = arith.constant 1.000000e+00 : f32
    %10 = vector.broadcast %cst_8 : f32 to vector<1x8xf32>
    %11 = arith.addf %10, %9 : vector<1x8xf32>
    %12 = arith.divf %10, %11 : vector<1x8xf32>
    %13 = vector.shape_cast %12 : vector<1x8xf32> to vector<1x8x1xf32>
    %14 = vector.broadcast %13 : vector<1x8x1xf32> to vector<1x8x324xf32>
    %15 = arith.mulf %14, %0 : vector<1x8x324xf32>
    %c0_9 = arith.constant 0 : index
    %c0_10 = arith.constant 0 : index
    %c0_11 = arith.constant 0 : index
    %16 = vector.load %arg4[%c0_9, %c0_10, %c0_11] : memref<1x8x324xf32, #tpu.memory_space<vmem>>, vector<1x8x324xf32>
    tpu.vector_store %arg4[%c0_9, %c0_10, %c0_11], %15 {strides = array<i32>} : memref<1x8x324xf32, #tpu.memory_space<vmem>>, vector<1x8x324xf32>,
    return
  }
  func.func @transform_0(%arg0: i32) -> (i32, i32, i32) {
    %c0_i32 = arith.constant 0 : i32
    %c0_i32_0 = arith.constant 0 : i32
    %c0_i32_1 = arith.constant 0 : i32
    return %arg0, %c0_i32, %c0_i32_0 : i32, i32, i32
  }
  func.func @transform_1(%arg0: i32) -> (i32, i32) {
    %c0_i32 = arith.constant 0 : i32
    %c0_i32_0 = arith.constant 0 : i32
    %c0_i32_1 = arith.constant 0 : i32
    return %c0_i32, %c0_i32_0 : i32, i32
  }
  func.func @transform_2(%arg0: i32) -> (i32, i32) {
    %c0_i32 = arith.constant 0 : i32
    %c0_i32_0 = arith.constant 0 : i32
    %c0_i32_1 = arith.constant 0 : i32
    return %c0_i32, %c0_i32_0 : i32, i32
  }
  func.func @transform_3(%arg0: i32) -> (i32, i32, i32) {
    %c0_i32 = arith.constant 0 : i32
    %c0_i32_0 = arith.constant 0 : i32
    %c0_i32_1 = arith.constant 0 : i32
    return %arg0, %c0_i32, %c0_i32_0 : i32, i32, i32
  }
}

</mosaic_0001>

<bundles_post_ra>
// kernel: tpu_custom_call.1
= control target key start
LH: loop header
LB: loop body
LE: loop exit
PB: predicated region body
PF: predicated region fallthrough
CT: control target
= control target key end

     0   :  { %8 = vsyncpa [#allocation3], 0  ;;  %s828_s0 = inlined_call_operand.hbm [shape: f32[2,8,324], index: 0, kind: input, shape index: {}]   ;;  %s829_s1 = inlined_call_operand.hbm [shape: f32[8,8], index: 1, kind: input, shape index: {}]   ;;  %s830_s2 = inlined_call_operand.vmem [shape: f32[1,8], index: 2, kind: input, shape index: {}]   ;;  %s831_s3 = inlined_call_operand.hbm [shape: f32[2,8,324], index: 3, kind: output, shape index: {}]  }
   0x1   :  { %10 = vsyncpa [#allocation3 + $0x1], 0 }
   0x2   :  { %11 = vsyncpa [#allocation6], 0 }
   0x3   :  { %12 = vsyncpa [#allocation4], 0 }
   0x4   :  { %14 = vsyncpa [#allocation4 + $0x1], 0  ;;  %s641_s12 = smov 0   ;;  %s643_s13 = smov 0  }
   0x5   :  { %s645_s14 = smov 0   ;;  %s647_s15 = smov 0  }
   0x6 LB: > { %s662_s16 = sadd.s32 4294967295, %s614_s15   ;;  %s406_s17 = sadd.s32 4294967294, %s614_s15   ;;  %s614_s15 = sphi %s647_s15, %s854_s15   ;;  %s610_s14 = sphi %s645_s14, %s853_s14   ;;  %s606_s13 = sphi %s643_s13, %s852_s13   ;;  %s602_s12 = sphi %s641_s12, %s851_s12  }
   0x7   : > { %p40_p0 = scmp.ne.s32.totalorder %s606_s13, %s602_s12  ;;  %p832_p1 = scmp.eq.s32.totalorder %s662_s16, 0 }
   0x8   : > { %p112_p3 = scmp.eq.s32.totalorder %s406_s17, 1  ;;  %p407_p5 = scmp.ge.s32.totalorder %s614_s15, 1 }
   0x9   : > { %p671_p4 = por %p832_p1, %p40_p0  ;;  %p119_p7 = scmp.lt.s32.totalorder %s614_s15, 3 }
   0xa   : > { %p676_p6 = por %p112_p3, %p40_p0  ;;  %s616_s21 = smov [#allocation5]  }
   0xb   : > { %s836_s18 = scalar_select %p671_p4, 1, 0 }
   0xc   : > { %s837_s19 = scalar_select %p676_p6, 1, 0 }
   0xd   : > { %p681_p8 = pnand %p407_p5, %p119_p7  ;;  %s132_s22 = sshll.u32 %s616_s21, 4  ;;  %s133_s22 = int_to_ptr.vmem [resolvable:$true] %s132_s22 }
   0xe   : > { %s689_s23 = sadd.s32 1, %s614_s15   ;;  %s27_s27 = sadd.s32 1, %s610_s14 }
   0xf   : > { %s838_s20 = scalar_select %p681_p8, 1, 0 }
  0x10   : > { %p437_p10 = pneg %p681_p8  ;;  %s24_s25 = ssub.s32 %s614_s15, %s689_s23 }
  0x11   : > { %p699_p12 = scmp.eq.s32.totalorder %s24_s25, 0  ;;  %p34_p13 = scmp.ne.s32.totalorder %s610_s14, %s606_s13 }
  0x12   : > { %p693_p11 = pnand %p437_p10, %p832_p1  ;;  %s503_s28 = scalar_lea.vmem %s133_s22, 128 }
  0x13   : > { %p504_p3 = scmp.ne.s32.totalorder %s133_s22, %s503_s28  ;;  %p511_p9 = scmp.lt.s32.totalorder %s133_s22, %s133_s22 }
  0x14   : > { %p494_p0 = pneg %p693_p11  ;;  %p512_p2 = scmp.lt.s32.totalorder %s503_s28, %s503_s28 }
  0x16   : > { %p506_p5 = pnand %p504_p3, %p494_p0  ;;  %p513_p10 = por %p512_p2, %p511_p9 }
  0x18   : > { %p507_p7 = pneg %p506_p5 }
  0x1a   : > { %p514_p1 = pnand %p513_p10, %p507_p7 }
  0x1c   : > { %517 = shalt.err (!%p514_p1)
}
  0x1d   : > { %440 = dma.hbm_to_vmem [thread:$0]  (!%p693_p11), %s829_s1, 128, %s133_s22, [#allocation6]  }
  0x1e   : > { %s716_s4 = scalar_select %p699_p12, %s610_s14, %s27_s27  }
  0x1f   : > { %p35_p1 = scmp.eq.s32.totalorder %s614_s15, 0  ;;  %p841_p2 = scmp.eq.s32.totalorder %s662_s16, 1 }
  0x20   : > { %p450_p0 = scmp.lt.s32.totalorder %s614_s15, 2  ;;  %s146_s6 = sand.u32 1, %s610_s14  }
  0x21   : > { %p724_p9 = por %p841_p2, %p34_p13  ;;  %p36_p3 = por %p35_p1, %p34_p13 }
  0x22   : > { %s425_s7 = smul.u32 24, %s146_s6  ;;  %s147_s24 = scalar_lea.sflag [#allocation3], %s146_s6 }
  0x23   : > { %s842_s5 = scalar_select %p724_p9, 1, 0 }
  0x24   : > { %s426_s8 = smul.u32 384, %s614_s15  ;;  %p734_p5 = pnand %p450_p0, %p36_p3 }
  0x25   : > { %s150_s21 = scalar_lea.vmem [#allocation2], %s425_s7  ;;  %s523_s28 = scalar_lea.hbm %s828_s0, 768 }
  0x26   : > { %s741_s17 = scalar_lea.hbm %s828_s0, %s426_s8  ;;  %s158_s22 = sshll.u32 %s150_s21, 4  ;;  %s159_s22 = int_to_ptr.vmem [resolvable:$true] %s158_s22 }
  0x27   : > { %s518_s25 = scalar_lea.hbm %s741_s17, 384  ;;  %p520_p12 = pneg %p734_p5 }
  0x28   : > { %p519_p11 = scmp.ne.s32.totalorder %s741_s17, %s518_s25  ;;  %p524_p10 = scmp.lt.s32.totalorder %s741_s17, %s828_s0 }
  0x29   : > { %p525_p1 = scmp.lt.s32.totalorder %s523_s28, %s518_s25 }
  0x2a   : > { %p521_p13 = pnand %p520_p12, %p519_p11 }
  0x2b   : > { %p526_p2 = por %p525_p1, %p524_p10 }
  0x2c   : > { %p522_p7 = pneg %p521_p13 }
  0x2e   : > { %p527_p0 = pnand %p526_p2, %p522_p7 }
  0x30   : > { %530 = shalt.err (!%p527_p0)
}
  0x31   : > { %s531_s7 = scalar_lea.vmem %s159_s22, 384  ;;  %s617_s6 = smov [#allocation2]  }
  0x32   : > { %p532_p3 = scmp.ne.s32.totalorder %s159_s22, %s531_s7  ;;  %s536_s8 = sshll.u32 %s617_s6, 4  ;;  %s537_s8 = int_to_ptr.vmem [resolvable:$false] %s536_s8 }
  0x33   : > { %s538_s10 = scalar_lea.vmem %s537_s8, 768  ;;  %p539_p11 = scmp.lt.s32.totalorder %s159_s22, %s537_s8 }
  0x34   : > { %p534_p6 = pnand %p532_p3, %p520_p12  ;;  %p540_p13 = scmp.lt.s32.totalorder %s538_s10, %s531_s7 }
  0x36   : > { %p535_p9 = pneg %p534_p6  ;;  %p541_p4 = por %p540_p13, %p539_p11 }
  0x38   : > { %p542_p8 = pnand %p541_p4, %p535_p9 }
  0x3a   : > { %545 = shalt.err (!%p542_p8)
}
  0x3b   : > { %444 = dma.hbm_to_vmem [thread:$0]  (!%p734_p5), %s741_s17, 384, %s159_s22, %s147_s24  }
  0x3c   : > { %p844_p7 = scmp.ne.s32.totalorder %s838_s20, 0 }
  0x3d   : > { %s760_s11 = sand.u32 (!%p844_p7), 1, %s606_s13   ;;  %p845_p4 = scmp.ne.s32.totalorder (!%p844_p7), %s836_s18, 0 }
  0x3e   : > { %167 = sbr.rel (%p844_p7) target bundleno = 578 (0x242), region = 32  ;;  %s170_s25 = scalar_lea.sflag (!%p844_p7), [#allocation3], %s760_s11 }
  0x3f   : > { %s427_s21 = smul.u32 (!%p844_p7), 24, %s760_s11 }
  0x41   : > { %s173_s26 = scalar_lea.vmem (!%p844_p7), [#allocation2], %s427_s21 }
  0x43   : > { %589 = dma.done.wait (%p845_p4), %s170_s25, 384  }
  0x44   : > { %591 = vsyncadd (%p845_p4), %s170_s25, 4294966912  ;;  %p846_p6 = scmp.eq.s32.totalorder %s662_s16, 0 }
  0x46   : > { %593 = dma.done.wait (%p846_p6), [#allocation6], 128   ;;  %p847_p8 = pmov %p846_p6 }
  0x47   : > { %vm204_vm0 = vcmask 556032   ;;  %v200_v0 = vld [vmem:[%s173_s26] sm:$0xff]  ;;  %v201_v1 = vld [vmem:[%s173_s26 + $0x8] sm:$0xff]  ;;  %v202_v2 = vld [vmem:[%s173_s26 + $0x10] sm:$0xff]  ;;  %v618_v6 = vmov 0.0   ;;  %vm619_vm1 = vmmov 0   ;;  %v213_v8 = vlaneseq }
  0x48   : > { %595 = vsyncadd (%p847_p8), [#allocation6], 4294967168  ;;  %v203_v3 = vadd.f32 %v201_v1, %v200_v0  ;;  %v205_v4 = vsel %vm204_vm0, %v202_v2, 0.0  ;;  %420 = vmatprep.subr.mxu0 %v618_v6  ;;  %v210_v7 = vld [vmem:[#allocation5] sm:$0xff]  ;;  %422 = vmatprep.mubr.msk.f32.mxu0 %vm619_vm1, %v618_v6  ;;  %vm219_vm2 = vcmask 64512   ;;  %s428_s9 = smul.u32 384, %s662_s16 }
  0x49   : > { %421 = vmatpush3.msra.mxu0 %v210_v7  ;;  %v214_v9 = vand.u32 127, %v213_v8  ;;  %v216_v10 = vshrl.u32 %v213_v8, 7  ;;  %v211_v15 = vld [vmem:[%s830_s2] sm:$0x1]  ;;  %s199_s17 = scalar_lea.vmem [#allocation7], %s427_s21  ;;  %s312_s16 = scalar_lea.sflag [#allocation4], %s760_s11 }
  0x4a   : > { %v206_v5 = vadd.f32 %v205_v4, %v203_v3  ;;  %s326_s22 = sshll.u32 %s199_s17, 4  ;;  %s784_s28 = scalar_lea.hbm %s831_s3, %s428_s9  ;;  %s786_s22 = int_to_ptr.vmem [resolvable:$true] %s326_s22 }
  0x4b   : > { %v217_v11 = vsub.s32 %v214_v9, %v216_v10  ;;  %v300_v22 = vsub.s32 0, %v216_v10  ;;  %s546_s29 = scalar_lea.vmem %s786_s22, 384  ;;  %p848_p5 = scmp.ne.s32.totalorder %s842_s5, 0 }
  0x4c   : > { %207 = vadd.xlane.f32.xlu0 %v206_v5  ;;  %p547_p9 = scmp.ne.s32.totalorder %s786_s22, %s546_s29  ;;  %s620_s30 = smov [#allocation7]  }
  0x4d   : > { %s550_s7 = sshll.u32 %s620_s30, 4  ;;  %s551_s7 = int_to_ptr.vmem [resolvable:$false] %s550_s7 }
  0x4e   : > { %p548_p12 = pnand %p547_p9, %p848_p5  ;;  %s552_s6 = scalar_lea.vmem %s551_s7, 768 }
  0x4f   : > { %p553_p1 = scmp.lt.s32.totalorder %s786_s22, %s551_s7  ;;  %p554_p2 = scmp.lt.s32.totalorder %s552_s6, %s546_s29 }
  0x50   : > { %p549_p10 = pneg %p548_p12 }
  0x51   : > { %p555_p0 = por %p554_p2, %p553_p1 }
  0x53   : > { %p556_p3 = pnand %p555_p0, %p549_p10 }
  0xd5   : > { %v208_v12 = vpop.xlane.xlu0 %207 }
  0xd6   : > { %v209_v13 = vmul.f32 0.0030864198, %v208_v12 }
  0xd8   : > { %v218_v14 = vrot.slane %v209_v13, %v217_v11 }
  0xda   : > { %423 = vmatmul.mubr.msk.f32.vlgmr.msra.gmra.mxu0 %vm219_vm2, %v218_v14 }
 0x19a   : > { %v288_v16 = vpop.f32.mrf.mxu0 }
 0x19b   : > { %v289_v17 = vadd.f32 %v288_v16, %v211_v15 }
 0x19c   : > { %v424_v18 = vpop.f32.mrf.mxu0 }
 0x19d   : > { %v414_v19 = vmul.f32 -1.442695, %v289_v17 }
 0x19f   : > { %488 = vpow2.f32 %v414_v19 }
 0x1ac   : > { %v489_v20 = vpop.eup %488 }
 0x1ad   : > { %v295_v21 = vadd.f32 1.0, %v489_v20 }
 0x1af   : > { %490 = vrcp.f32 %v295_v21 }
 0x1bc   : > { %v491_v23 = vpop.eup %490 }
 0x1bd   : > { %v301_v24 = vrot.slane %v491_v23, %v300_v22 }
 0x1bf   : > { %303 = vbcast.lane.b32.xlu0 %v301_v24, 256 }
 0x231   : > { %v304_v25 = vpop.permute.xlu0 %303 }
 0x232   : > { %v305_v26 = vmul.f32 %v304_v25, %v200_v0  ;;  %v306_v27 = vmul.f32 %v304_v25, %v201_v1  ;;  %v307_v28 = vmul.f32 %v304_v25, %v202_v2 }
 0x234   : > { %308 = vst [vmem:[%s199_s17] sm:$0xff] %v305_v26  ;;  %309 = vst [vmem:[%s199_s17 + $0x8] sm:$0xff] %v306_v27 }
 0x235   : > { %310 = vst.msk [vmem:[%s199_s17 + $0x10] sm:$0xff] %vm204_vm0, %v307_v28 }
 0x236   : > { %559 = shalt.err (!%p556_p3)
}
 0x237   : > { %s560_s8 = scalar_lea.hbm %s784_s28, 384  ;;  %s564_s21 = scalar_lea.hbm %s831_s3, 768 }
 0x238   : > { %p561_p11 = scmp.ne.s32.totalorder %s784_s28, %s560_s8  ;;  %p565_p4 = scmp.lt.s32.totalorder %s784_s28, %s831_s3 }
 0x239   : > { %p566_p6 = scmp.lt.s32.totalorder %s564_s21, %s560_s8 }
 0x23a   : > { %p562_p13 = pnand %p561_p11, %p848_p5 }
 0x23b   : > { %p567_p8 = por %p566_p6, %p565_p4 }
 0x23c   : > { %p563_p7 = pneg %p562_p13 }
 0x23e   : > { %p568_p9 = pnand %p567_p8, %p563_p7 }
 0x240   : > { %571 = shalt.err (!%p568_p9)
}
 0x241   : > { %435 = dma.vmem_to_hbm [thread:$0]  (%p848_p5), %s786_s22, 384, %s784_s28, %s312_s16  }
 0x242 PF: > { %s338_s18 = sand.u32 1, %s602_s12   ;;  %p849_p12 = scmp.ne.s32.totalorder %s837_s19, 0 }
 0x243   : > { %p850_p10 = scmp.ge.s32.totalorder %s614_s15, 2  ;;  %s339_s20 = scalar_lea.sflag [#allocation4], %s338_s18 }
 0x245   : > { %p446_p1 = pnand %p850_p10, %p849_p12 }
 0x247   : > { %p447_p2 = pneg %p446_p1 }
 0x249   : > { %597 = dma.done.wait (%p447_p2), %s339_s20, 384  }
 0x24a   : > { %599 = vsyncadd (%p447_p2), %s339_s20, 4294966912  ;;  %p17_p0 = scmp.ge.s32.totalorder %s689_s23, 4   ;;  %s851_s12 = smov %s606_s13 }
 0x24b   : > { %s852_s13 = smov %s610_s14  ;;  %s853_s14 = smov %s716_s4 }
 0x24c   : > { %s854_s15 = smov %s689_s23  ;;  %19 = sbr.rel (!%p17_p0) target bundleno = 6 (0x6), region = 81 }
 0x251   :  { %344 = vsyncpa [#allocation3], 1 }
 0x252   :  { %346 = vsyncpa [#allocation3 + $0x1], 1 }
 0x253   :  { %347 = vsyncpa [#allocation6], 1 }
 0x254   :  { %348 = vsyncpa [#allocation4], 1 }
 0x255   :  { %350 = vsyncpa [#allocation4 + $0x1], 1 }

</bundles_post_ra>
